<compile_context>
chip_gen: v5e
topology: v5e:2x2
jax: 0.10.0
libtpu: 0.0.40
codegen_flags: <defaults>
</compile_context>

<pallas_src>
import functools

import jax
import jax.numpy as jnp
from jax.experimental import pallas as pl
from jax.experimental.pallas import tpu as pltpu


def _round_up(x, m):
    return (x + m - 1) // m * m


# ----------------------------------------------------------------------------
# Fused kernel: (unfold -> conv matmul -> bias -> ReLU -> max-over-time) x3
#               -> concat -> FC -> sigmoid
# ----------------------------------------------------------------------------
def _textcnn_fused_kernel(*refs, kernel_sizes, seq_len):
    n = len(kernel_sizes)
    emb_ref = refs[0]                       # (block_b*L, E) bf16
    conv_w_refs = refs[1:1 + n]             # each (k*E, C)   bf16
    conv_b_refs = refs[1 + n:1 + 2 * n]     # each (1, C)     f32
    fcw_ref = refs[1 + 2 * n]               # (n*C, n_pad)    bf16
    fcb_ref = refs[2 + 2 * n]               # (1, n_pad)      f32
    o_ref = refs[3 + 2 * n]                 # (block_b, n_pad) f32

    L = seq_len
    x_bf = emb_ref[...]                     # bf16 slab (HBM traffic halved)
    xf = x_bf.astype(jnp.float32)           # unpack once; shifts done in f32 layout
    M, E = xf.shape
    block_b = M // L

    pooled = []
    for idx, k in enumerate(kernel_sizes):
        T = L - k + 1
        # In-VMEM unfold: column block j holds the slab shifted up by j rows.
        # Row m = b*L + t of x_unf is the window [emb[b,t], ..., emb[b,t+k-1]];
        # rows with t > L-k contain leaked/zero rows and are masked before the max.
        cols = [xf]
        for j in range(1, k):
            cols.append(jnp.concatenate(
                [xf[j:, :], jnp.zeros((j, E), jnp.float32)], axis=0))
        x_unf = jnp.concatenate(cols, axis=-1).astype(jnp.bfloat16)   # (M, k*E)

        z = jnp.dot(x_unf, conv_w_refs[idx][...],
                    preferred_element_type=jnp.float32)               # (M, C)
        z = jnp.maximum(z + conv_b_refs[idx][...], 0.0)               # bias + ReLU
        C = z.shape[-1]

        z3 = z.reshape(block_b, L, C)                                 # (Bt, L, C)
        t_idx = jax.lax.broadcasted_iota(jnp.int32, z3.shape, 1)
        # Invalid window positions -> 0; post-ReLU values are >= 0 so 0 is a
        # neutral element for the max.
        z3 = jnp.where(t_idx < T, z3, 0.0)
        pooled.append(jnp.max(z3, axis=1))                            # (Bt, C)

    feats = jnp.concatenate(pooled, axis=-1)                          # (Bt, n*C) f32
    logits = jnp.dot(feats.astype(fcw_ref.dtype), fcw_ref[...],
                     preferred_element_type=jnp.float32) + fcb_ref[...]
    # Numerically stable sigmoid via tanh (EUP op, no inf intermediate).
    o_ref[...] = 0.5 * (jnp.tanh(0.5 * logits) + 1.0)


# ----------------------------------------------------------------------------
# Full forward pass (embedding gather is plain-JAX glue, rest is one kernel)
# ----------------------------------------------------------------------------
@functools.partial(jax.jit, static_argnames=("kernel_sizes",))
def cnn_classifier_forward(params, token_ids, kernel_sizes=(3, 4, 5)):
    # Embedding lookup (data-dependent gather) — glue.
    emb = jnp.take(params["embedding"], token_ids, axis=0)           # (B, L, E) f32
    B, L, E = emb.shape
    num_classes = params["fc_w"].shape[1]
    feat_dim = params["fc_w"].shape[0]                               # len(ks) * C
    n_pad = _round_up(max(num_classes, 128), 128)                    # lane-dense output

    # Batch blocking: fold several batch rows into the matmul M dimension.
    if B * L <= 2048:
        block_b, b_pad = B, B                                        # single grid step
    else:
        block_b = _round_up(max(8, 512 // L), 8)                     # Bt*L ~ few hundred
        b_pad = _round_up(B, block_b)

    emb = emb.astype(jnp.bfloat16)                                   # bf16 MXU operands
    if b_pad != B:
        emb = jnp.pad(emb, ((0, b_pad - B), (0, 0), (0, 0)))
    emb2 = emb.reshape(b_pad * L, E)                                 # (B*L, E) slab

    # Zero-pad FC weights to a lane-dense (128-multiple) class dimension.
    fc_w = jnp.zeros((feat_dim, n_pad), jnp.float32)
    fc_w = fc_w.at[:, :num_classes].set(params["fc_w"]).astype(jnp.bfloat16)
    fc_b = jnp.zeros((1, n_pad), jnp.float32).at[:, :num_classes].set(params["fc_b"])

    inputs = [emb2]
    in_specs = [pl.BlockSpec((block_b * L, E), lambda b: (b, 0))]
    for i, _ in enumerate(kernel_sizes):
        w = params[f"conv{i}_w"].astype(jnp.bfloat16)                # (k*E, C)
        inputs.append(w)
        in_specs.append(pl.BlockSpec(w.shape, lambda b: (0, 0)))
    for i, _ in enumerate(kernel_sizes):
        bb = params[f"conv{i}_b"]                                    # (1, C) f32
        inputs.append(bb)
        in_specs.append(pl.BlockSpec(bb.shape, lambda b: (0, 0)))
    inputs += [fc_w, fc_b]
    in_specs += [pl.BlockSpec(fc_w.shape, lambda b: (0, 0)),
                 pl.BlockSpec(fc_b.shape, lambda b: (0, 0))]

    kernel = functools.partial(_textcnn_fused_kernel,
                               kernel_sizes=tuple(kernel_sizes), seq_len=L)

    out = pl.pallas_call(
        kernel,
        out_shape=jax.ShapeDtypeStruct((b_pad, n_pad), jnp.float32),
        grid_spec=pltpu.PrefetchScalarGridSpec(
            num_scalar_prefetch=0,
            grid=(b_pad // block_b,),
            in_specs=in_specs,
            out_specs=pl.BlockSpec((block_b, n_pad), lambda b: (b, 0)),
        ),
        compiler_params=pltpu.CompilerParams(
            dimension_semantics=("parallel",),
            vmem_limit_bytes=32 * 1024 * 1024),
    )(*inputs)

    # Dropout: inference-mode identity.
    return out[:B, :num_classes]                                     # (B, num_classes)


# ----------------------------------------------------------------------------
# Pure-JAX reference (same weight layout) for correctness checking
# ----------------------------------------------------------------------------
def cnn_classifier_forward_ref(params, token_ids, kernel_sizes=(3, 4, 5)):
    emb = jnp.take(params["embedding"], token_ids, axis=0)           # f32
    B, L, E = emb.shape
    pooled = []
    for i, k in enumerate(kernel_sizes):
        T = L - k + 1
        windows = jnp.concatenate([emb[:, j:j + T, :] for j in range(k)], axis=-1)
        y = jnp.einsum("btf,fc->btc", windows, params[f"conv{i}_w"]) \
            + params[f"conv{i}_b"]
        y = jnp.maximum(y, 0.0)
        pooled.append(jnp.max(y, axis=1))
    feats = jnp.concatenate(pooled, axis=-1)
    logits = feats @ params["fc_w"] + params["fc_b"]
    return jax.nn.sigmoid(logits)


def init_params(key, vocab_size, embed_size, num_classes,
                kernel_sizes=(3, 4, 5), num_channels=16):
    keys = jax.random.split(key, 2 + 2 * len(kernel_sizes) + 2)
    params = {}
    emb = 0.02 * jax.random.normal(keys[0], (vocab_size, embed_size), jnp.float32)
    emb = emb.at[0].set(0.0)                                         # padding_idx=0
    params["embedding"] = emb
    for i, k in enumerate(kernel_sizes):
        params[f"conv{i}_w"] = 0.05 * jax.random.normal(
            keys[1 + 2 * i], (k * embed_size, num_channels), jnp.float32)
        params[f"conv{i}_b"] = 0.05 * jax.random.normal(
            keys[2 + 2 * i], (1, num_channels), jnp.float32)
    params["fc_w"] = 0.05 * jax.random.normal(
        keys[-2], (len(kernel_sizes) * num_channels, num_classes), jnp.float32)
    params["fc_b"] = 0.05 * jax.random.normal(
        keys[-1], (1, num_classes), jnp.float32)
    return params


if __name__ == "__main__":
    VOCAB = 50
    EMBED = 32
    NUM_CLASSES = 5
    KERNEL_SIZES = (3, 4, 5)
    NUM_CHANNELS = 16
    B, L = 2, 8

    key = jax.random.PRNGKey(0)
    pkey, xkey = jax.random.split(key)
    params = init_params(pkey, VOCAB, EMBED, NUM_CLASSES,
                         KERNEL_SIZES, NUM_CHANNELS)
    token_ids = jax.random.randint(xkey, (B, L), 0, VOCAB, dtype=jnp.int32)

    out = cnn_classifier_forward(params, token_ids, kernel_sizes=KERNEL_SIZES)
    out = jax.block_until_ready(out)
    ref = jax.block_until_ready(
        cnn_classifier_forward_ref(params, token_ids, KERNEL_SIZES))

    assert out.shape == (B, NUM_CLASSES)
    assert bool(jnp.all((out >= 0.0) & (out <= 1.0)))
    max_err = float(jnp.max(jnp.abs(out - ref)))
    assert max_err < 1e-2, f"mismatch vs reference: max abs err {max_err}"
    print("KERNEL_OK")
</pallas_src>

<mosaic_0001>
module attributes {stable_mosaic.version = 11 : i64} {
  func.func @_textcnn_fused_kernel(%arg0: i32, %arg1: memref<16x32xbf16, #tpu.memory_space<vmem>>, %arg2: memref<96x16xbf16, #tpu.memory_space<vmem>>, %arg3: memref<128x16xbf16, #tpu.memory_space<vmem>>, %arg4: memref<160x16xbf16, #tpu.memory_space<vmem>>, %arg5: memref<1x16xf32, #tpu.memory_space<vmem>>, %arg6: memref<1x16xf32, #tpu.memory_space<vmem>>, %arg7: memref<1x16xf32, #tpu.memory_space<vmem>>, %arg8: memref<48x128xbf16, #tpu.memory_space<vmem>>, %arg9: memref<1x128xf32, #tpu.memory_space<vmem>>, %arg10: memref<2x128xf32, #tpu.memory_space<vmem>>) attributes {dimension_semantics = [#tpu.dimension_semantics<parallel>], iteration_bounds = array<i64: 1>, scalar_prefetch = 0 : i64, scratch_operands = 0 : i64, tpu.core_type = #tpu.core_type<tc>, window_params = [{transform_indices = @transform_0, window_bounds = array<i64: 16, 32>}, {pipeline_mode = #tpu.pipeline_mode<synchronous>, transform_indices = @transform_1, window_bounds = array<i64: 96, 16>}, {pipeline_mode = #tpu.pipeline_mode<synchronous>, transform_indices = @transform_2, window_bounds = array<i64: 128, 16>}, {pipeline_mode = #tpu.pipeline_mode<synchronous>, transform_indices = @transform_3, window_bounds = array<i64: 160, 16>}, {pipeline_mode = #tpu.pipeline_mode<synchronous>, transform_indices = @transform_4, window_bounds = array<i64: 1, 16>}, {pipeline_mode = #tpu.pipeline_mode<synchronous>, transform_indices = @transform_5, window_bounds = array<i64: 1, 16>}, {pipeline_mode = #tpu.pipeline_mode<synchronous>, transform_indices = @transform_6, window_bounds = array<i64: 1, 16>}, {pipeline_mode = #tpu.pipeline_mode<synchronous>, transform_indices = @transform_7, window_bounds = array<i64: 48, 128>}, {pipeline_mode = #tpu.pipeline_mode<synchronous>, transform_indices = @transform_8, window_bounds = array<i64: 1, 128>}, {transform_indices = @transform_9, window_bounds = array<i64: 2, 128>}]} {
    %c0 = arith.constant 0 : index
    %c0_0 = arith.constant 0 : index
    %0 = vector.load %arg1[%c0, %c0_0] : memref<16x32xbf16, #tpu.memory_space<vmem>>, vector<16x32xbf16>
    %1 = arith.extf %0 : vector<16x32xbf16> to vector<16x32xf32>
    %2 = vector.extract_strided_slice %1 {offsets = [1, 0], sizes = [15, 32], strides = [1, 1]} : vector<16x32xf32> to vector<15x32xf32>
    %cst = arith.constant 0.000000e+00 : f32
    %3 = vector.broadcast %cst : f32 to vector<1x32xf32>
    %4 = tpu.concatenate %2, %3 in 0 : vector<15x32xf32>, vector<1x32xf32> -> vector<16x32xf32>
    %5 = vector.extract_strided_slice %1 {offsets = [2, 0], sizes = [14, 32], strides = [1, 1]} : vector<16x32xf32> to vector<14x32xf32>
    %cst_1 = arith.constant 0.000000e+00 : f32
    %6 = vector.broadcast %cst_1 : f32 to vector<2x32xf32>
    %7 = tpu.concatenate %5, %6 in 0 : vector<14x32xf32>, vector<2x32xf32> -> vector<16x32xf32>
    %8 = tpu.concatenate %1, %4, %7 in 1 : vector<16x32xf32>, vector<16x32xf32>, vector<16x32xf32> -> vector<16x96xf32>
    %9 = arith.truncf %8 : vector<16x96xf32> to vector<16x96xbf16>
    %c0_2 = arith.constant 0 : index
    %c0_3 = arith.constant 0 : index
    %10 = vector.load %arg2[%c0_2, %c0_3] : memref<96x16xbf16, #tpu.memory_space<vmem>>, vector<96x16xbf16>
    %cst_4 = arith.constant dense<0.000000e+00> : vector<16x16xf32>
    %11 = tpu.matmul %9, %10, %cst_4 {dimension_numbers = #tpu.dot_dimension_numbers<[1], [0], [0], [1], [0, 0, 1, 1], [], []>} : vector<16x96xbf16>, vector<96x16xbf16>, vector<16x16xf32> -> vector<16x16xf32>
    %c0_5 = arith.constant 0 : index
    %c0_6 = arith.constant 0 : index
    %12 = vector.load %arg5[%c0_5, %c0_6] : memref<1x16xf32, #tpu.memory_space<vmem>>, vector<1x16xf32>
    %13 = vector.broadcast %12 : vector<1x16xf32> to vector<16x16xf32>
    %14 = arith.addf %11, %13 : vector<16x16xf32>
    %cst_7 = arith.constant 0.000000e+00 : f32
    %15 = vector.broadcast %cst_7 : f32 to vector<16x16xf32>
    %16 = arith.maximumf %14, %15 : vector<16x16xf32>
    %17 = vector.shape_cast %16 : vector<16x16xf32> to vector<2x8x16xf32>
    %18 = tpu.iota {dimensions = array<i32: 1>} : vector<2x8x16xi32>
    %c6_i32 = arith.constant 6 : i32
    %19 = vector.broadcast %c6_i32 : i32 to vector<2x8x16xi32>
    %20 = arith.cmpi slt, %18, %19 : vector<2x8x16xi32>
    %cst_8 = arith.constant 0.000000e+00 : f32
    %21 = vector.broadcast %cst_8 : f32 to vector<2x8x16xf32>
    %22 = arith.select %20, %17, %21 : vector<2x8x16xi1>, vector<2x8x16xf32>
    %cst_9 = arith.constant dense<0xFF800000> : vector<2x16xf32>
    %23 = vector.multi_reduction <maximumf>, %22, %cst_9 [1] : vector<2x8x16xf32> to vector<2x16xf32>
    %24 = vector.extract_strided_slice %1 {offsets = [1, 0], sizes = [15, 32], strides = [1, 1]} : vector<16x32xf32> to vector<15x32xf32>
    %cst_10 = arith.constant 0.000000e+00 : f32
    %25 = vector.broadcast %cst_10 : f32 to vector<1x32xf32>
    %26 = tpu.concatenate %24, %25 in 0 : vector<15x32xf32>, vector<1x32xf32> -> vector<16x32xf32>
    %27 = vector.extract_strided_slice %1 {offsets = [2, 0], sizes = [14, 32], strides = [1, 1]} : vector<16x32xf32> to vector<14x32xf32>
    %cst_11 = arith.constant 0.000000e+00 : f32
    %28 = vector.broadcast %cst_11 : f32 to vector<2x32xf32>
    %29 = tpu.concatenate %27, %28 in 0 : vector<14x32xf32>, vector<2x32xf32> -> vector<16x32xf32>
    %30 = vector.extract_strided_slice %1 {offsets = [3, 0], sizes = [13, 32], strides = [1, 1]} : vector<16x32xf32> to vector<13x32xf32>
    %cst_12 = arith.constant 0.000000e+00 : f32
    %31 = vector.broadcast %cst_12 : f32 to vector<3x32xf32>
    %32 = tpu.concatenate %30, %31 in 0 : vector<13x32xf32>, vector<3x32xf32> -> vector<16x32xf32>
    %33 = tpu.concatenate %1, %26, %29, %32 in 1 : vector<16x32xf32>, vector<16x32xf32>, vector<16x32xf32>, vector<16x32xf32> -> vector<16x128xf32>
    %34 = arith.truncf %33 : vector<16x128xf32> to vector<16x128xbf16>
    %c0_13 = arith.constant 0 : index
    %c0_14 = arith.constant 0 : index
    %35 = vector.load %arg3[%c0_13, %c0_14] : memref<128x16xbf16, #tpu.memory_space<vmem>>, vector<128x16xbf16>
    %cst_15 = arith.constant dense<0.000000e+00> : vector<16x16xf32>
    %36 = tpu.matmul %34, %35, %cst_15 {dimension_numbers = #tpu.dot_dimension_numbers<[1], [0], [0], [1], [0, 0, 1, 1], [], []>} : vector<16x128xbf16>, vector<128x16xbf16>, vector<16x16xf32> -> vector<16x16xf32>
    %c0_16 = arith.constant 0 : index
    %c0_17 = arith.constant 0 : index
    %37 = vector.load %arg6[%c0_16, %c0_17] : memref<1x16xf32, #tpu.memory_space<vmem>>, vector<1x16xf32>
    %38 = vector.broadcast %37 : vector<1x16xf32> to vector<16x16xf32>
    %39 = arith.addf %36, %38 : vector<16x16xf32>
    %cst_18 = arith.constant 0.000000e+00 : f32
    %40 = vector.broadcast %cst_18 : f32 to vector<16x16xf32>
    %41 = arith.maximumf %39, %40 : vector<16x16xf32>
    %42 = vector.shape_cast %41 : vector<16x16xf32> to vector<2x8x16xf32>
    %43 = tpu.iota {dimensions = array<i32: 1>} : vector<2x8x16xi32>
    %c5_i32 = arith.constant 5 : i32
    %44 = vector.broadcast %c5_i32 : i32 to vector<2x8x16xi32>
    %45 = arith.cmpi slt, %43, %44 : vector<2x8x16xi32>
    %cst_19 = arith.constant 0.000000e+00 : f32
    %46 = vector.broadcast %cst_19 : f32 to vector<2x8x16xf32>
    %47 = arith.select %45, %42, %46 : vector<2x8x16xi1>, vector<2x8x16xf32>
    %cst_20 = arith.constant dense<0xFF800000> : vector<2x16xf32>
    %48 = vector.multi_reduction <maximumf>, %47, %cst_20 [1] : vector<2x8x16xf32> to vector<2x16xf32>
    %49 = vector.extract_strided_slice %1 {offsets = [1, 0], sizes = [15, 32], strides = [1, 1]} : vector<16x32xf32> to vector<15x32xf32>
    %cst_21 = arith.constant 0.000000e+00 : f32
    %50 = vector.broadcast %cst_21 : f32 to vector<1x32xf32>
    %51 = tpu.concatenate %49, %50 in 0 : vector<15x32xf32>, vector<1x32xf32> -> vector<16x32xf32>
    %52 = vector.extract_strided_slice %1 {offsets = [2, 0], sizes = [14, 32], strides = [1, 1]} : vector<16x32xf32> to vector<14x32xf32>
    %cst_22 = arith.constant 0.000000e+00 : f32
    %53 = vector.broadcast %cst_22 : f32 to vector<2x32xf32>
    %54 = tpu.concatenate %52, %53 in 0 : vector<14x32xf32>, vector<2x32xf32> -> vector<16x32xf32>
    %55 = vector.extract_strided_slice %1 {offsets = [3, 0], sizes = [13, 32], strides = [1, 1]} : vector<16x32xf32> to vector<13x32xf32>
    %cst_23 = arith.constant 0.000000e+00 : f32
    %56 = vector.broadcast %cst_23 : f32 to vector<3x32xf32>
    %57 = tpu.concatenate %55, %56 in 0 : vector<13x32xf32>, vector<3x32xf32> -> vector<16x32xf32>
    %58 = vector.extract_strided_slice %1 {offsets = [4, 0], sizes = [12, 32], strides = [1, 1]} : vector<16x32xf32> to vector<12x32xf32>
    %cst_24 = arith.constant 0.000000e+00 : f32
    %59 = vector.broadcast %cst_24 : f32 to vector<4x32xf32>
    %60 = tpu.concatenate %58, %59 in 0 : vector<12x32xf32>, vector<4x32xf32> -> vector<16x32xf32>
    %61 = tpu.concatenate %1, %51, %54, %57, %60 in 1 : vector<16x32xf32>, vector<16x32xf32>, vector<16x32xf32>, vector<16x32xf32>, vector<16x32xf32> -> vector<16x160xf32>
    %62 = arith.truncf %61 : vector<16x160xf32> to vector<16x160xbf16>
    %c0_25 = arith.constant 0 : index
    %c0_26 = arith.constant 0 : index
    %63 = vector.load %arg4[%c0_25, %c0_26] : memref<160x16xbf16, #tpu.memory_space<vmem>>, vector<160x16xbf16>
    %cst_27 = arith.constant dense<0.000000e+00> : vector<16x16xf32>
    %64 = tpu.matmul %62, %63, %cst_27 {dimension_numbers = #tpu.dot_dimension_numbers<[1], [0], [0], [1], [0, 0, 1, 1], [], []>} : vector<16x160xbf16>, vector<160x16xbf16>, vector<16x16xf32> -> vector<16x16xf32>
    %c0_28 = arith.constant 0 : index
    %c0_29 = arith.constant 0 : index
    %65 = vector.load %arg7[%c0_28, %c0_29] : memref<1x16xf32, #tpu.memory_space<vmem>>, vector<1x16xf32>
    %66 = vector.broadcast %65 : vector<1x16xf32> to vector<16x16xf32>
    %67 = arith.addf %64, %66 : vector<16x16xf32>
    %cst_30 = arith.constant 0.000000e+00 : f32
    %68 = vector.broadcast %cst_30 : f32 to vector<16x16xf32>
    %69 = arith.maximumf %67, %68 : vector<16x16xf32>
    %70 = vector.shape_cast %69 : vector<16x16xf32> to vector<2x8x16xf32>
    %71 = tpu.iota {dimensions = array<i32: 1>} : vector<2x8x16xi32>
    %c4_i32 = arith.constant 4 : i32
    %72 = vector.broadcast %c4_i32 : i32 to vector<2x8x16xi32>
    %73 = arith.cmpi slt, %71, %72 : vector<2x8x16xi32>
    %cst_31 = arith.constant 0.000000e+00 : f32
    %74 = vector.broadcast %cst_31 : f32 to vector<2x8x16xf32>
    %75 = arith.select %73, %70, %74 : vector<2x8x16xi1>, vector<2x8x16xf32>
    %cst_32 = arith.constant dense<0xFF800000> : vector<2x16xf32>
    %76 = vector.multi_reduction <maximumf>, %75, %cst_32 [1] : vector<2x8x16xf32> to vector<2x16xf32>
    %77 = tpu.concatenate %23, %48, %76 in 1 : vector<2x16xf32>, vector<2x16xf32>, vector<2x16xf32> -> vector<2x48xf32>
    %78 = arith.truncf %77 : vector<2x48xf32> to vector<2x48xbf16>
    %c0_33 = arith.constant 0 : index
    %c0_34 = arith.constant 0 : index
    %79 = vector.load %arg8[%c0_33, %c0_34] : memref<48x128xbf16, #tpu.memory_space<vmem>>, vector<48x128xbf16>
    %cst_35 = arith.constant dense<0.000000e+00> : vector<2x128xf32>
    %80 = tpu.matmul %78, %79, %cst_35 {dimension_numbers = #tpu.dot_dimension_numbers<[1], [0], [0], [1], [0, 0, 1, 1], [], []>} : vector<2x48xbf16>, vector<48x128xbf16>, vector<2x128xf32> -> vector<2x128xf32>
    %c0_36 = arith.constant 0 : index
    %c0_37 = arith.constant 0 : index
    %81 = vector.load %arg9[%c0_36, %c0_37] : memref<1x128xf32, #tpu.memory_space<vmem>>, vector<1x128xf32>
    %82 = vector.broadcast %81 : vector<1x128xf32> to vector<2x128xf32>
    %83 = arith.addf %80, %82 : vector<2x128xf32>
    %cst_38 = arith.constant 5.000000e-01 : f32
    %84 = vector.broadcast %cst_38 : f32 to vector<2x128xf32>
    %85 = arith.mulf %84, %83 : vector<2x128xf32>
    %86 = math.tanh %85 : vector<2x128xf32>
    %cst_39 = arith.constant 1.000000e+00 : f32
    %87 = vector.broadcast %cst_39 : f32 to vector<2x128xf32>
    %88 = arith.addf %86, %87 : vector<2x128xf32>
    %cst_40 = arith.constant 5.000000e-01 : f32
    %89 = vector.broadcast %cst_40 : f32 to vector<2x128xf32>
    %90 = arith.mulf %89, %88 : vector<2x128xf32>
    %c0_41 = arith.constant 0 : index
    %c0_42 = arith.constant 0 : index
    %91 = vector.load %arg10[%c0_41, %c0_42] : memref<2x128xf32, #tpu.memory_space<vmem>>, vector<2x128xf32>
    tpu.vector_store %arg10[%c0_41, %c0_42], %90 {strides = array<i32>} : memref<2x128xf32, #tpu.memory_space<vmem>>, vector<2x128xf32>,
    return
  }
  func.func @transform_0(%arg0: i32) -> (i32, i32) {
    %c0_i32 = arith.constant 0 : i32
    %c0_i32_0 = arith.constant 0 : i32
    return %arg0, %c0_i32 : i32, i32
  }
  func.func @transform_1(%arg0: i32) -> (i32, i32) {
    %c0_i32 = arith.constant 0 : i32
    %c0_i32_0 = arith.constant 0 : i32
    %c0_i32_1 = arith.constant 0 : i32
    return %c0_i32, %c0_i32_0 : i32, i32
  }
  func.func @transform_2(%arg0: i32) -> (i32, i32) {
    %c0_i32 = arith.constant 0 : i32
    %c0_i32_0 = arith.constant 0 : i32
    %c0_i32_1 = arith.constant 0 : i32
    return %c0_i32, %c0_i32_0 : i32, i32
  }
  func.func @transform_3(%arg0: i32) -> (i32, i32) {
    %c0_i32 = arith.constant 0 : i32
    %c0_i32_0 = arith.constant 0 : i32
    %c0_i32_1 = arith.constant 0 : i32
    return %c0_i32, %c0_i32_0 : i32, i32
  }
  func.func @transform_4(%arg0: i32) -> (i32, i32) {
    %c0_i32 = arith.constant 0 : i32
    %c0_i32_0 = arith.constant 0 : i32
    %c0_i32_1 = arith.constant 0 : i32
    return %c0_i32, %c0_i32_0 : i32, i32
  }
  func.func @transform_5(%arg0: i32) -> (i32, i32) {
    %c0_i32 = arith.constant 0 : i32
    %c0_i32_0 = arith.constant 0 : i32
    %c0_i32_1 = arith.constant 0 : i32
    return %c0_i32, %c0_i32_0 : i32, i32
  }
  func.func @transform_6(%arg0: i32) -> (i32, i32) {
    %c0_i32 = arith.constant 0 : i32
    %c0_i32_0 = arith.constant 0 : i32
    %c0_i32_1 = arith.constant 0 : i32
    return %c0_i32, %c0_i32_0 : i32, i32
  }
  func.func @transform_7(%arg0: i32) -> (i32, i32) {
    %c0_i32 = arith.constant 0 : i32
    %c0_i32_0 = arith.constant 0 : i32
    %c0_i32_1 = arith.constant 0 : i32
    return %c0_i32, %c0_i32_0 : i32, i32
  }
  func.func @transform_8(%arg0: i32) -> (i32, i32) {
    %c0_i32 = arith.constant 0 : i32
    %c0_i32_0 = arith.constant 0 : i32
    %c0_i32_1 = arith.constant 0 : i32
    return %c0_i32, %c0_i32_0 : i32, i32
  }
  func.func @transform_9(%arg0: i32) -> (i32, i32) {
    %c0_i32 = arith.constant 0 : i32
    %c0_i32_0 = arith.constant 0 : i32
    return %arg0, %c0_i32 : i32, i32
  }
}

</mosaic_0001>

<bundles_post_ra>
// kernel: cnn_classifier_forward.1
= control target key start
LH: loop header
LB: loop body
LE: loop exit
PB: predicated region body
PF: predicated region fallthrough
CT: control target
= control target key end

     0   :  { %vm40_vm0 = vcmask 1046528   ;;  %vm165_vm1 = vcmask 1044480   ;;  %vm46_vm2 = vcmask 1045504   ;;  %s898_s0 = inlined_call_operand.vmem [shape: bf16[16,32], index: 0, kind: input, shape index: {}]   ;;  %s899_s1 = inlined_call_operand.vmem [shape: bf16[96,16], index: 1, kind: input, shape index: {}]   ;;  %s900_s2 = inlined_call_operand.vmem [shape: bf16[128,16], index: 2, kind: input, shape index: {}]   ;;  %s901_s3 = inlined_call_operand.vmem [shape: bf16[160,16], index: 3, kind: input, shape index: {}]   ;;  %s902_s4 = inlined_call_operand.vmem [shape: f32[1,16], index: 4, kind: input, shape index: {}]   ;;  %s903_s5 = inlined_call_operand.vmem [shape: f32[1,16], index: 5, kind: input, shape index: {}]   ;;  %s904_s6 = inlined_call_operand.vmem [shape: f32[1,16], index: 6, kind: input, shape index: {}]   ;;  %s905_s7 = inlined_call_operand.vmem [shape: bf16[48,128], index: 7, kind: input, shape index: {}]   ;;  %s906_s8 = inlined_call_operand.vmem [shape: f32[1,128], index: 8, kind: input, shape index: {}]   ;;  %s907_s9 = inlined_call_operand.hbm [shape: f32[2,128], index: 9, kind: output, shape index: {}]  }
   0x1   :  { %v649_v0 = vld [vmem:[%s898_s0] sm:$0xff]   ;;  %v634_v3 = vld [vmem:[%s900_s2 + $0x38] sm:$0xff]  ;;  %v626_v5 = vld [vmem:[%s899_s1 + $0x28] sm:$0xff] }
   0x2   :  { %v762_v1 = vunpack.c.l.bf16 %v649_v0  ;;  %v764_v2 = vunpack.c.h.bf16 %v649_v0  ;;  %v642_v4 = vld [vmem:[%s901_s3 + $0x38] sm:$0xff]  ;;  %249 = vmatpush.bf16.msra.mxu1 %v634_v3  ;;  %v633_v8 = vld [vmem:[%s900_s2 + $0x30] sm:$0xff]  ;;  %131 = vmatpush.bf16.msra.mxu0 %v626_v5  ;;  %v625_v12 = vld [vmem:[%s899_s1 + $0x20] sm:$0xff] }
   0x3   :  { %377 = vmatpush.bf16.msra.mxu2 %v642_v4  ;;  %v641_v9 = vld [vmem:[%s901_s3 + $0x30] sm:$0xff]  ;;  %v632_v20 = vld [vmem:[%s900_s2 + $0x28] sm:$0xff] }
   0x4   :  { %v41_v6 = vrot.slane %v762_v1, 1  ;;  %v42_v7 = vrot.slane %v764_v2, 1  ;;  %v166_v10 = vrot.slane %v762_v1, 3  ;;  %v167_v11 = vrot.slane %v764_v2, 3  ;;  %v640_v22 = vld [vmem:[%s901_s3 + $0x28] sm:$0xff] }
   0x5   :  { %v47_v15 = vrot.slane %v762_v1, 2  ;;  %v48_v16 = vrot.slane %v764_v2, 2 }
   0x6   :  { %v43_v13 = vsel %vm40_vm0, %v41_v6, %v42_v7  ;;  %v45_v14 = vsel %vm40_vm0, %v42_v7, 0.0  ;;  %v168_v18 = vsel %vm165_vm1, %v166_v10, %v167_v11  ;;  %v170_v19 = vsel %vm165_vm1, %v167_v11, 0.0  ;;  %250 = vmatpush.bf16.msra.mxu1 %v633_v8 }
   0x7   :  { %v657_v17 = vpack.i.bf16 %v45_v14, %v43_v13  ;;  %v667_v21 = vpack.i.bf16 %v170_v19, %v168_v18  ;;  %378 = vmatpush.bf16.msra.mxu2 %v641_v9 }
   0x8   :  { %14 = vsyncpa [#allocation3], 0  ;;  %s704_s26 = smov 32   ;;  %132 = vmatpush.bf16.msra.mxu0 %v625_v12  ;;  %v624_v23 = vld [vmem:[%s899_s1 + $0x18] sm:$0xff]  ;;  %v49_v24 = vsel %vm46_vm2, %v47_v15, %v48_v16  ;;  %v51_v25 = vsel %vm46_vm2, %v48_v16, 0.0  ;;  %s705_s29 = smov 96   ;;  %v145_v0 = vlaneseq }
   0x9   :  { %658 = vrot.lane.b32.xlu0 %v657_v17, %s704_s26  ;;  %668 = vrot.lane.b32.xlu1 %v667_v21, %s705_s29  ;;  %v631_v26 = vld [vmem:[%s900_s2 + $0x20] sm:$0xff]  ;;  %v662_v28 = vpack.i.bf16 %v51_v25, %v49_v24  ;;  %v630_v29 = vld [vmem:[%s900_s2 + $0x18] sm:$0xff]  ;;  %s706_s0 = smov 64   ;;  %v283_v42 = vrot.slane %v762_v1, 4  ;;  %v284_v43 = vrot.slane %v764_v2, 4  ;;  %vm282_vm3 = vcmask 1043456  }
   0xa   :  { %251 = vmatpush.bf16.msra.mxu1 %v632_v20  ;;  %v639_v27 = vld [vmem:[%s901_s3 + $0x20] sm:$0xff]  ;;  %v638_v30 = vld [vmem:[%s901_s3 + $0x18] sm:$0xff]  ;;  %v623_v31 = vld [vmem:[%s899_s1 + $0x10] sm:$0xff]  ;;  %vm66_vm4 = vcmask 261120   ;;  %vm69_vm5 = vcmask 523264   ;;  %vm125_vm6 = vcmask 785408  }
   0xb   :  { %379 = vmatpush.bf16.msra.mxu2 %v640_v22  ;;  %v629_v32 = vld [vmem:[%s900_s2 + $0x10] sm:$0xff]  ;;  %v622_v34 = vld [vmem:[%s899_s1 + $0x8] sm:$0xff]  ;;  %v621_v38 = vld [vmem:[%s899_s1] sm:$0xff]  ;;  %v285_v44 = vsel %vm282_vm3, %v283_v42, %v284_v43  ;;  %v288_v45 = vsel %vm282_vm3, %v284_v43, 0.0  ;;  %v146_v4 = vshrl.u32 %v145_v0, 7  ;;  %vm150_vm8 = vcmask 130048  }
   0xc   :  { %133 = vmatpush.bf16.msra.mxu0 %v624_v23  ;;  %v637_v33 = vld [vmem:[%s901_s3 + $0x10] sm:$0xff]  ;;  %v628_v35 = vld [vmem:[%s900_s2 + $0x8] sm:$0xff]  ;;  %v627_v39 = vld [vmem:[%s900_s2] sm:$0xff]  ;;  %v289_v46 = vpack.c.bf16 %v288_v45, %v285_v44  ;;  %vm426_vm11 = vcmask 1041409   ;;  %vm472_vm12 = vcmask 392192   ;;  %s501_s30 = sshll.u32 %s907_s9, 4  ;;  %s502_s30 = int_to_ptr.hbm [resolvable:$true] %s501_s30 }
   0xd   :  { %v636_v36 = vld [vmem:[%s901_s3 + $0x8] sm:$0xff]  ;;  %v635_v40 = vld [vmem:[%s901_s3] sm:$0xff]  ;;  %vm147_vm7 = vcmp.lt.s32.totalorder %v146_v4, 6  ;;  %vm265_vm9 = vcmp.lt.s32.totalorder %v146_v4, 5  ;;  %vm407_vm10 = vcmp.lt.s32.totalorder %v146_v4, 4 }
   0xe   :  { %252 = vmatpush.bf16.msra.mxu1 %v631_v26  ;;  %v644_v37 = vld [vmem:[%s901_s3 + $0x48] sm:$0xff]  ;;  %v643_v41 = vld [vmem:[%s901_s3 + $0x40] sm:$0xff] }
   0xf   :  { %380 = vmatpush.bf16.msra.mxu2 %v639_v27  ;;  %397 = vmatpush.bf16.msra.mxu3 %v644_v37  ;;  %v672_v3 = vld [vmem:[%s902_s4] ss:$0 sm:$0xff]  ;;  %s707_s4 = smov 16  }
  0x10   :  { %134 = vmatpush.bf16.msra.mxu0 %v623_v31  ;;  %v674_v10 = vld [vmem:[%s904_s6] ss:$0 sm:$0xff] }
  0x11   :  { %663 = vrot.lane.b32.xlu0 %v662_v28, %s706_s0 }
  0x12   :  { %253 = vmatpush.bf16.msra.mxu1 %v630_v29 }
  0x13   :  { %381 = vmatpush.bf16.msra.mxu2 %v638_v30  ;;  %398 = vmatpush.bf16.msra.mxu3 %v643_v41 }
  0x14   :  { %135 = vmatpush.bf16.msra.mxu0 %v622_v34 }
  0x16   :  { %254 = vmatpush.bf16.msra.mxu1 %v629_v32  ;;  %607 = vmatmul.msk.bf16.vlgmr.msra.gmra.mxu3 %vm66_vm4, %v289_v46 }
  0x17   :  { %382 = vmatpush.bf16.msra.mxu2 %v637_v33 }
  0x18   :  { %136 = vmatpush.bf16.msra.mxu0 %v621_v38 }
  0x1a   :  { %255 = vmatpush.bf16.msra.mxu1 %v628_v35 }
  0x1b   :  { %383 = vmatpush.bf16.msra.mxu2 %v636_v36 }
  0x1e   :  { %256 = vmatpush.bf16.msra.mxu1 %v627_v39 }
  0x1f   :  { %384 = vmatpush.bf16.msra.mxu2 %v635_v40 }
  0x7b   :  { %v659_v47 = vpop.permute.xlu0 %658  ;;  %v669_v48 = vpop.permute.xlu1 %668 }
  0x7c   :  { %v661_v49 = vunpack.i.h.bf16 %v659_v47  ;;  %v660_v50 = vunpack.i.l.bf16 %v659_v47  ;;  %v671_v52 = vunpack.i.h.bf16 %v669_v48  ;;  %v670_v53 = vunpack.i.l.bf16 %v669_v48 }
  0x7e   :  { %v68_v56 = vsel %vm66_vm4, %v764_v2, %v661_v49  ;;  %v67_v57 = vsel %vm66_vm4, %v762_v1, %v660_v50  ;;  %v673_v2 = vld [vmem:[%s903_s5] ss:$0 sm:$0xff] }
  0x83   :  { %v664_v51 = vpop.permute.xlu0 %663 }
  0x84   :  { %v666_v54 = vunpack.i.h.bf16 %v664_v51  ;;  %v665_v55 = vunpack.i.l.bf16 %v664_v51 }
  0x86   :  { %v70_v58 = vsel %vm69_vm5, %v67_v57, %v665_v55  ;;  %v71_v59 = vsel %vm69_vm5, %v68_v56, %v666_v54 }
  0x87   :  { %v72_v60 = vpack.c.bf16 %v71_v59, %v70_v58  ;;  %v178_v61 = vsel %vm125_vm6, %v70_v58, %v670_v53  ;;  %v179_v62 = vsel %vm125_vm6, %v71_v59, %v671_v52 }
  0x88   :  { %v180_v63 = vpack.c.bf16 %v179_v62, %v178_v61 }
  0x89   :  { %534 = vmatmul.msk.bf16.vlgmr.msra.gmra.mxu0 %vm125_vm6, %v72_v60 }
  0x8a   :  { %257 = vmatmul.bf16.vlgmr.msra.gmra.mxu1 %v180_v63  ;;  %385 = vmatmul.bf16.vlgmr.msra.gmra.mxu2 %v180_v63 }
  0x99   :  { %v400_v12 = vpop.f32.mrf.mxu3 }
  0xa1   :  { %v402_v40 = vpop.f32.mrf.mxu3 }
 0x106   :  { %v138_v1 = vpop.f32.mrf.mxu0 }
 0x107   :  { %v139_v5 = vadd.f32 %v672_v3, %v138_v1  ;;  %v258_v6 = vpop.f32.mrf.mxu1 }
 0x108   :  { %v259_v7 = vadd.f32 %v673_v2, %v258_v6 }
 0x109   :  { %v143_v8 = vmax.f32 %v139_v5, 0.0 }
 0x10a   :  { %v263_v9 = vmax.f32 %v259_v7, 0.0 }
 0x10b   :  { %v148_v11 = vsel %vm147_vm7, %v143_v8, 0.0 }
 0x10c   :  { %v151_v13 = vsel %vm150_vm8, %v148_v11, -inf  ;;  %v266_v14 = vsel %vm265_vm9, %v263_v9, 0.0 }
 0x10d   :  { %v152_v15 = vrot.slane %v151_v13, 4  ;;  %v268_v16 = vsel %vm150_vm8, %v266_v14, -inf  ;;  %v386_v17 = vpop.f32.mrf.mxu2  ;;  %v647_v14 = vld [vmem:[%s905_s7 + $0x10] sm:$0xff] }
 0x10e   :  { %v269_v18 = vrot.slane %v268_v16, 4  ;;  %v387_v19 = vadd.f32 %v674_v10, %v386_v17  ;;  %v140_v20 = vpop.f32.mrf.mxu0  ;;  %481 = vmatpush.bf16.msrb.mxu3 %v647_v14 }
 0x10f   :  { %v153_v21 = vmax.f32 %v151_v13, %v152_v15  ;;  %v141_v22 = vadd.f32 %v672_v3, %v140_v20  ;;  %v260_v23 = vpop.f32.mrf.mxu1  ;;  %v646_v15 = vld [vmem:[%s905_s7 + $0x8] sm:$0xff] }
 0x110   :  { %v270_v24 = vmax.f32 %v268_v16, %v269_v18  ;;  %v261_v25 = vadd.f32 %v673_v2, %v260_v23  ;;  %v401_v26 = vadd.f32 %v400_v12, %v387_v19  ;;  %v645_v16 = vld [vmem:[%s905_s7] sm:$0xff]  ;;  %s708_s7 = smov [#allocation2]  }
 0x111   :  { %v144_v27 = vmax.f32 %v141_v22, 0.0  ;;  %v154_v30 = vrot.slane %v153_v21, 2  ;;  %v675_v22 = vld [vmem:[%s906_s8] ss:$0 sm:$0xff]  ;;  %s499_s27 = sshll.u32 %s708_s7, 4  ;;  %s500_s27 = int_to_ptr.vmem [resolvable:$true] %s499_s27 }
 0x112   :  { %v264_v28 = vmax.f32 %v261_v25, 0.0  ;;  %v405_v29 = vmax.f32 %v401_v26, 0.0  ;;  %v271_v32 = vrot.slane %v270_v24, 2  ;;  %482 = vmatpush.bf16.msrb.mxu3 %v646_v15 }
 0x113   :  { %v149_v31 = vsel %vm147_vm7, %v144_v27, 0.0  ;;  %v155_v44 = vmax.f32 %v153_v21, %v154_v30 }
 0x114   :  { %v158_v33 = vsel %vm150_vm8, %v149_v31, -inf  ;;  %v267_v34 = vsel %vm265_vm9, %v264_v28, 0.0  ;;  %v408_v35 = vsel %vm407_vm10, %v405_v29, 0.0  ;;  %v272_v46 = vmax.f32 %v270_v24, %v271_v32 }
 0x115   :  { %v159_v36 = vrot.slane %v158_v33, 4  ;;  %v275_v37 = vsel %vm150_vm8, %v267_v34, -inf  ;;  %v410_v38 = vsel %vm150_vm8, %v408_v35, -inf  ;;  %v388_v39 = vpop.f32.mrf.mxu2  ;;  %v156_v53 = vrot.slane %v155_v44, 1 }
 0x116   :  { %v276_v41 = vrot.slane %v275_v37, 4  ;;  %v411_v42 = vrot.slane %v410_v38, 4  ;;  %v389_v43 = vadd.f32 %v674_v10, %v388_v39  ;;  %v273_v58 = vrot.slane %v272_v46, 1  ;;  %483 = vmatpush.bf16.msrb.mxu3 %v645_v16 }
 0x117   :  { %v160_v45 = vmax.f32 %v158_v33, %v159_v36  ;;  %v157_v63 = vmax.f32 %v155_v44, %v156_v53 }
 0x118   :  { %v277_v47 = vmax.f32 %v275_v37, %v276_v41  ;;  %v412_v48 = vmax.f32 %v410_v38, %v411_v42  ;;  %v403_v49 = vadd.f32 %v402_v40, %v389_v43  ;;  %v274_v2 = vmax.f32 %v272_v46, %v273_v58 }
 0x119   :  { %v161_v50 = vrot.slane %v160_v45, 2 }
 0x11a   :  { %v278_v51 = vrot.slane %v277_v47, 2  ;;  %v406_v52 = vmax.f32 %v403_v49, 0.0  ;;  %v413_v56 = vrot.slane %v412_v48, 2 }
 0x11b   :  { %v162_v54 = vmax.f32 %v160_v45, %v161_v50 }
 0x11c   :  { %v279_v55 = vmax.f32 %v277_v47, %v278_v51  ;;  %v409_v57 = vsel %vm407_vm10, %v406_v52, 0.0  ;;  %v414_v5 = vmax.f32 %v412_v48, %v413_v56 }
 0x11d   :  { %v163_v59 = vrot.slane %v162_v54, 1  ;;  %v417_v60 = vsel %vm150_vm8, %v409_v57, -inf }
 0x11e   :  { %v418_v61 = vrot.slane %v417_v60, 4  ;;  %v280_v62 = vrot.slane %v279_v55, 1  ;;  %v415_v4 = vrot.slane %v414_v5, 1 }
 0x11f   :  { %v164_v0 = vmax.f32 %v162_v54, %v163_v59 }
 0x120   :  { %v419_v3 = vmax.f32 %v417_v60, %v418_v61  ;;  %v281_v1 = vmax.f32 %v279_v55, %v280_v62  ;;  %v416_v11 = vmax.f32 %v414_v5, %v415_v4 }
 0x121   :  { %v427_v6 = vsel %vm426_vm11, %v164_v0, %v157_v63 }
 0x122   :  { %v420_v7 = vrot.slane %v419_v3, 2  ;;  %v431_v8 = vsel %vm426_vm11, %v281_v1, %v274_v2 }
 0x123   :  { %432 = vrot.lane.b32.xlu1 %v431_v8, %s707_s4 }
 0x124   :  { %v421_v9 = vmax.f32 %v419_v3, %v420_v7 }
 0x126   :  { %v422_v10 = vrot.slane %v421_v9, 1 }
 0x128   :  { %v423_v12 = vmax.f32 %v421_v9, %v422_v10 }
 0x12a   :  { %v437_v13 = vsel %vm426_vm11, %v423_v12, %v416_v11 }
 0x12b   :  { %438 = vrot.lane.b32.xlu2 %v437_v13, %s704_s26 }
 0x185   :  { %v439_v18 = vpop.permute.xlu2 %438 }
 0x195   :  { %v433_v17 = vpop.permute.xlu1 %432 }
 0x196   :  { %v441_v19 = vsel %vm150_vm8, %v427_v6, %v433_v17 }
 0x197   :  { %v442_v20 = vsel %vm66_vm4, %v441_v19, %v439_v18 }
 0x198   :  { %v443_v21 = vpack.c.bf16 %v442_v20, %v442_v20 }
 0x19a   :  { %620 = vmatmul.msk.bf16.vlgmr.msrb.gmra.mxu3 %vm472_vm12, %v443_v21 }
 0x21d   :  { %v485_v23 = vpop.f32.mrf.mxu3 }
 0x21e   :  { %v486_v24 = vadd.f32 %v675_v22, %v485_v23 }
 0x220   :  { %v489_v25 = vmul.f32 0.5, %v486_v24 }
 0x222   :  { %676 = vtanh.f32 %v489_v25 }
 0x225   :  { %v487_v26 = vpop.f32.mrf.mxu3 }
 0x228   :  { %v677_v27 = vpop.eup %676 }
 0x229   :  { %v491_v28 = vadd.f32 1.0, %v677_v27 }
 0x22b   :  { %v492_v29 = vmul.f32 0.5, %v491_v28 }
 0x22d   :  { %493 = vst [vmem:[#allocation2] sm:$0x3] %v492_v29 }
 0x22e   :  { %504 = dma.vmem_to_hbm [thread:$0]  %s500_s27, 32, %s502_s30, [#allocation3]  }
 0x22f   :  { %702 = dma.done.wait [#allocation3], 32  }
 0x230   :  { %703 = vsyncadd [#allocation3], 4294967264 }
 0x231   :  { %509 = vsyncpa [#allocation3], 1 }

</bundles_post_ra>
